<compile_context>
chip_gen: v6e
topology: v6e:2x2x1
jax: 0.10.0
libtpu: 0.0.40
codegen_flags: <defaults>
</compile_context>

<pallas_src>
import functools

import jax
import jax.numpy as jnp
import numpy as np
from jax.experimental import pallas as pl
from jax.experimental.pallas import tpu as pltpu


# --------------------------------------------------------------------------------------
# Kernels
# --------------------------------------------------------------------------------------
def _conv_stats_kernel(x_ref, w_ref, y_ref, sum_ref, ssq_ref):
    """ReLU + block-diagonal 1x1-conv matmul + per-lane partial BN statistics.

    Layout: (2*C_in) stacked input channels on sublanes, flattened (N, H2, W2) samples
    on lanes.  Stats are accumulated from the in-register result with VPU adds only.
    """
    i = pl.program_id(1)

    a = jnp.maximum(x_ref[...], 0.0)                                    # fused ReLU
    y = jnp.dot(w_ref[...], a, preferred_element_type=jnp.float32)      # (C_out, tile)
    y_ref[...] = y                                                      # one aligned store

    @pl.when(i == 0)
    def _():
        sum_ref[...] = jnp.zeros_like(sum_ref)
        ssq_ref[...] = jnp.zeros_like(ssq_ref)

    # Per-lane partial sums: fold the tile into 128-lane chunks with plain vreg adds
    # (VPU), deferring the cross-lane (XLU) reduce to the wrapper.
    s = sum_ref[...]
    q = ssq_ref[...]
    for j in range(y.shape[1] // 128):
        blk = y[:, j * 128:(j + 1) * 128]
        s = s + blk
        q = q + blk * blk
    sum_ref[...] = s
    ssq_ref[...] = q


def _bn_apply_kernel(y_ref, scale_ref, shift_ref, o_ref):
    """Streaming BN apply on the channels-first slab: out = y * scale + shift."""
    o_ref[...] = y_ref[...] * scale_ref[...] + shift_ref[...]


def _bn_apply_nchw_kernel(y_ref, scale_ref, shift_ref, o_ref, *, hw):
    """BN apply that writes lane-dense (C_out, H2*W2) slabs straight into NCHW layout."""
    sc = scale_ref[...]
    sh = shift_ref[...]
    for j in range(o_ref.shape[0]):                     # static unroll over samples in block
        o_ref[j] = y_ref[:, j * hw:(j + 1) * hw] * sc + sh


# --------------------------------------------------------------------------------------
# Chip-aware budgets
# --------------------------------------------------------------------------------------
def _vmem_budget():
    """Returns (vmem_limit_bytes, double-buffered working-set cap)."""
    phys = 64 << 20                                      # conservative default (v7x per-TC)
    try:
        info = pltpu.get_tpu_info()
        v = getattr(info, "vmem_capacity_bytes", None)
        if v:
            phys = int(v)
    except Exception:
        pass
    limit = max(32 << 20, min(phys - (16 << 20), 100 << 20))
    return limit, limit // 2


def _num_tensorcores():
    """2 on multi-TensorCore chips (v4 / v5p / v7x), else 1 (v5e / v6e)."""
    try:
        kind = jax.devices()[0].device_kind.lower()
    except Exception:
        return 1
    return 2 if any(tag in kind for tag in ("v4", "v5p", "v7")) else 1


# --------------------------------------------------------------------------------------
# Forward pass
# --------------------------------------------------------------------------------------
def factorized_reduce(x, w0, w1, gamma, beta, *, eps=1e-5):
    """x: (N, C_in, H, W) f32 NCHW.  w0: (C0, C_in, 1, 1), w1: (C1, C_in, 1, 1)."""
    N, C_in, H, W = x.shape
    C0 = w0.shape[0]
    C1 = w1.shape[0]
    C_out = C0 + C1
    H2 = (H + 1) // 2
    W2 = (W + 1) // 2
    HW2 = H2 * W2
    P = N * HW2

    # --- layout glue (one fused slice/concat/transpose pass under jit) ----------------
    x0 = x[:, :, 0::2, 0::2]                            # path-0 samples
    ph, pw = H % 2, W % 2
    xsrc = jnp.pad(x, ((0, 0), (0, 0), (0, ph), (0, pw))) if (ph or pw) else x
    x1 = xsrc[:, :, 1::2, 1::2]                         # path-1 samples, shifted (1,1)
    xs = jnp.concatenate([x0, x1], axis=1)              # (N, 2*C_in, H2, W2)
    xs_t = xs.transpose(1, 0, 2, 3).reshape(2 * C_in, P)  # channels-first, lane-dense

    # block-diagonal weight: rows [:C0] see x0 channels, rows [C0:] see x1 channels
    wbd = jnp.zeros((C_out, 2 * C_in), jnp.float32)
    wbd = wbd.at[:C0, :C_in].set(w0.reshape(C0, C_in).astype(jnp.float32))
    wbd = wbd.at[C0:, C_in:].set(w1.reshape(C1, C_in).astype(jnp.float32))

    # --- chip-aware lane (column) tiling ----------------------------------------------
    vmem_limit, ws_cap = _vmem_budget()
    ncores = _num_tensorcores()

    def rup(a, b):
        return (a + b - 1) // b * b

    bytes_per_lane = 4 * (2 * C_in + C_out)             # per-step in + out bytes per lane
    tile = rup(max(512, (4 << 20) // bytes_per_lane), 128)   # target ~4 MiB DMA per step
    tile = min(tile, 16384)                             # bound the unrolled stats loop
    tile = min(tile, rup(P, 128))
    while tile > 128 and 2 * bytes_per_lane * tile > ws_cap:  # double-buffered VMEM cap
        tile = rup(tile // 2, 128)

    n_tiles = pl.cdiv(P, tile)
    if n_tiles < 2:
        ncores = 1
    tiles_per_core = pl.cdiv(n_tiles, ncores)
    P_pad = ncores * tiles_per_core * tile
    if P_pad != P:
        # zero cols -> relu 0 -> conv 0 -> contribute 0 to sums: stats stay exact
        xs_t = jnp.pad(xs_t, ((0, 0), (0, P_pad - P)))

    # --- kernel 1: ReLU + fused 1x1 convs + per-channel per-lane BN statistics --------
    conv_t, ch_sum, ch_ssq = pl.pallas_call(
        _conv_stats_kernel,
        out_shape=(
            jax.ShapeDtypeStruct((C_out, P_pad), jnp.float32),
            jax.ShapeDtypeStruct((C_out, ncores * 128), jnp.float32),
            jax.ShapeDtypeStruct((C_out, ncores * 128), jnp.float32),
        ),
        grid_spec=pltpu.PrefetchScalarGridSpec(
            num_scalar_prefetch=0,
            grid=(ncores, tiles_per_core),
            in_specs=[
                pl.BlockSpec((2 * C_in, tile), lambda c, i: (0, c * tiles_per_core + i)),
                pl.BlockSpec((C_out, 2 * C_in), lambda c, i: (0, 0)),
            ],
            out_specs=(
                pl.BlockSpec((C_out, tile), lambda c, i: (0, c * tiles_per_core + i)),
                pl.BlockSpec((C_out, 128), lambda c, i: (0, c)),
                pl.BlockSpec((C_out, 128), lambda c, i: (0, c)),
            ),
        ),
        compiler_params=pltpu.CompilerParams(
            dimension_semantics=("parallel", "arbitrary"),
            vmem_limit_bytes=vmem_limit),
    )(xs_t, wbd)

    # --- tiny stat reduce + BN scale/shift precompute (wrapper, (C_out,)-sized) -------
    # NOTE: single-pass E[x^2]-mean^2 variance; clamped, fine for NAS-Bench scales.
    sums = ch_sum.sum(axis=1)
    ssqs = ch_ssq.sum(axis=1)
    inv_n = 1.0 / float(P)
    mean = sums * inv_n
    var = jnp.maximum(ssqs * inv_n - mean * mean, 0.0)
    scale = gamma.astype(jnp.float32) * jax.lax.rsqrt(var + eps)
    shift = beta.astype(jnp.float32) - mean * scale
    scale2 = scale.reshape(C_out, 1)
    shift2 = shift.reshape(C_out, 1)

    # --- kernel 2: streaming BatchNorm apply ------------------------------------------
    if HW2 % 128 == 0:
        # Path A: write lane-dense slabs directly into (N, C_out, H2*W2); the final
        # NCHW conversion becomes a free reshape (no output-side transpose pass).
        nb = 1
        for cand in range(min(N, 128), 0, -1):
            if N % cand == 0 and 16 * C_out * HW2 * cand <= ws_cap:
                nb = cand
                break
        out_flat = pl.pallas_call(
            functools.partial(_bn_apply_nchw_kernel, hw=HW2),
            out_shape=jax.ShapeDtypeStruct((N, C_out, HW2), jnp.float32),
            grid_spec=pltpu.PrefetchScalarGridSpec(
                num_scalar_prefetch=0,
                grid=(N // nb,),
                in_specs=[
                    pl.BlockSpec((C_out, nb * HW2), lambda i: (0, i)),
                    pl.BlockSpec((C_out, 1), lambda i: (0, 0)),
                    pl.BlockSpec((C_out, 1), lambda i: (0, 0)),
                ],
                out_specs=pl.BlockSpec((nb, C_out, HW2), lambda i: (i, 0, 0)),
            ),
            compiler_params=pltpu.CompilerParams(
                dimension_semantics=("parallel",),
                vmem_limit_bytes=vmem_limit),
        )(conv_t, scale2, shift2)
        return out_flat.reshape(N, C_out, H2, W2)

    # Path B fallback: channels-first slab with the largest lane tile that fits VMEM,
    # written in place over conv_t, then one transpose back to NCHW.
    n1 = P_pad // tile
    mult = 1
    for cand in range(n1, 0, -1):
        if n1 % cand == 0 and 16 * C_out * tile * cand <= ws_cap:
            mult = cand
            break
    tile2 = mult * tile
    out_t = pl.pallas_call(
        _bn_apply_kernel,
        out_shape=jax.ShapeDtypeStruct((C_out, P_pad), jnp.float32),
        grid_spec=pltpu.PrefetchScalarGridSpec(
            num_scalar_prefetch=0,
            grid=(P_pad // tile2,),
            in_specs=[
                pl.BlockSpec((C_out, tile2), lambda i: (0, i)),
                pl.BlockSpec((C_out, 1), lambda i: (0, 0)),
                pl.BlockSpec((C_out, 1), lambda i: (0, 0)),
            ],
            out_specs=pl.BlockSpec((C_out, tile2), lambda i: (0, i)),
        ),
        compiler_params=pltpu.CompilerParams(
            dimension_semantics=("parallel",),
            vmem_limit_bytes=vmem_limit),
        input_output_aliases={0: 0},
    )(conv_t, scale2, shift2)
    out_t = out_t[:, :P]
    return out_t.reshape(C_out, N, H2, W2).transpose(1, 0, 2, 3)


# --------------------------------------------------------------------------------------
# Pure-JAX reference mirroring the PyTorch forward (BN in training mode)
# --------------------------------------------------------------------------------------
def _reference(x, w0, w1, gamma, beta, eps=1e-5):
    xr = jnp.maximum(x, 0.0)
    xp = jnp.pad(xr, ((0, 0), (0, 0), (0, 1), (0, 1)))
    dn = ("NCHW", "OIHW", "NCHW")
    c0 = jax.lax.conv_general_dilated(xr, w0, (2, 2), "VALID", dimension_numbers=dn)
    c1 = jax.lax.conv_general_dilated(xp[:, :, 1:, 1:], w1, (2, 2), "VALID",
                                      dimension_numbers=dn)
    out = jnp.concatenate([c0, c1], axis=1)
    mean = out.mean(axis=(0, 2, 3), keepdims=True)
    var = out.var(axis=(0, 2, 3), keepdims=True)        # biased, as in BN training mode
    g = gamma.reshape(1, -1, 1, 1)
    b = beta.reshape(1, -1, 1, 1)
    return (out - mean) / jnp.sqrt(var + eps) * g + b


if __name__ == "__main__":
    fr = jax.jit(factorized_reduce)

    def run_case(key, N, C_in, C_out, H, W):
        C0 = C_out // 2
        C1 = C_out - C_out // 2
        kx, k0, k1, kg, kb = jax.random.split(key, 5)
        x = jax.random.normal(kx, (N, C_in, H, W), dtype=jnp.float32)
        # Conv2d(C_in, C_outs[i], 1, stride=2, bias=False) weights: (C_out_i, C_in, 1, 1)
        w0 = jax.random.normal(k0, (C0, C_in, 1, 1), dtype=jnp.float32) * 0.1
        w1 = jax.random.normal(k1, (C1, C_in, 1, 1), dtype=jnp.float32) * 0.1
        gamma = 1.0 + 0.1 * jax.random.normal(kg, (C_out,), dtype=jnp.float32)
        beta = 0.1 * jax.random.normal(kb, (C_out,), dtype=jnp.float32)
        out = jax.block_until_ready(fr(x, w0, w1, gamma, beta))
        ref = _reference(x, w0, w1, gamma, beta)
        np.testing.assert_allclose(np.asarray(out), np.asarray(ref), rtol=1e-4, atol=1e-4)

    key = jax.random.PRNGKey(0)
    ka, kb = jax.random.split(key)
    run_case(ka, 2, 4, 8, 16, 16)    # H2*W2 = 64  -> channels-first fallback path
    run_case(kb, 2, 8, 16, 32, 32)   # H2*W2 = 256 -> direct-NCHW lane-dense BN apply
    print("KERNEL_OK")
</pallas_src>

<mosaic_0001>
module attributes {stable_mosaic.version = 11 : i64} {
  func.func @_conv_stats_kernel(%arg0: i32, %arg1: i32, %arg2: memref<8x128xf32, #tpu.memory_space<vmem>>, %arg3: memref<8x8xf32, #tpu.memory_space<vmem>>, %arg4: memref<8x128xf32, #tpu.memory_space<vmem>>, %arg5: memref<8x128xf32, #tpu.memory_space<vmem>>, %arg6: memref<8x128xf32, #tpu.memory_space<vmem>>) attributes {dimension_semantics = [#tpu.dimension_semantics<parallel>, #tpu.dimension_semantics<arbitrary>], iteration_bounds = array<i64: 1, 1>, scalar_prefetch = 0 : i64, scratch_operands = 0 : i64, tpu.core_type = #tpu.core_type<tc>, window_params = [{transform_indices = @transform_0, window_bounds = array<i64: 8, 128>}, {pipeline_mode = #tpu.pipeline_mode<synchronous>, transform_indices = @transform_1, window_bounds = array<i64: 8, 8>}, {transform_indices = @transform_2, window_bounds = array<i64: 8, 128>}, {transform_indices = @transform_3, window_bounds = array<i64: 8, 128>}, {transform_indices = @transform_4, window_bounds = array<i64: 8, 128>}]} {
    %c0 = arith.constant 0 : index
    %c0_0 = arith.constant 0 : index
    %0 = vector.load %arg2[%c0, %c0_0] : memref<8x128xf32, #tpu.memory_space<vmem>>, vector<8x128xf32>
    %cst = arith.constant 0.000000e+00 : f32
    %1 = vector.broadcast %cst : f32 to vector<8x128xf32>
    %2 = arith.maximumf %0, %1 : vector<8x128xf32>
    %c0_1 = arith.constant 0 : index
    %c0_2 = arith.constant 0 : index
    %3 = vector.load %arg3[%c0_1, %c0_2] : memref<8x8xf32, #tpu.memory_space<vmem>>, vector<8x8xf32>
    %cst_3 = arith.constant dense<0.000000e+00> : vector<8x128xf32>
    %4 = tpu.matmul %3, %2, %cst_3 {dimension_numbers = #tpu.dot_dimension_numbers<[1], [0], [0], [1], [0, 0, 1, 1], [], []>} : vector<8x8xf32>, vector<8x128xf32>, vector<8x128xf32> -> vector<8x128xf32>
    %c0_4 = arith.constant 0 : index
    %c0_5 = arith.constant 0 : index
    %5 = vector.load %arg4[%c0_4, %c0_5] : memref<8x128xf32, #tpu.memory_space<vmem>>, vector<8x128xf32>
    tpu.vector_store %arg4[%c0_4, %c0_5], %4 {strides = array<i32>} : memref<8x128xf32, #tpu.memory_space<vmem>>, vector<8x128xf32>,
    %c0_i32 = arith.constant 0 : i32
    %6 = arith.cmpi eq, %arg1, %c0_i32 : i32
    %7 = arith.extui %6 : i1 to i32
    %c0_i32_6 = arith.constant 0 : i32
    %8 = arith.cmpi ne, %7, %c0_i32_6 : i32
    scf.if %8 {
      %cst_15 = arith.constant 0.000000e+00 : f32
      %16 = vector.broadcast %cst_15 : f32 to vector<8x128xf32>
      %c0_16 = arith.constant 0 : index
      %c0_17 = arith.constant 0 : index
      %17 = vector.load %arg5[%c0_16, %c0_17] : memref<8x128xf32, #tpu.memory_space<vmem>>, vector<8x128xf32>
      tpu.vector_store %arg5[%c0_16, %c0_17], %16 {strides = array<i32>} : memref<8x128xf32, #tpu.memory_space<vmem>>, vector<8x128xf32>,
      %cst_18 = arith.constant 0.000000e+00 : f32
      %18 = vector.broadcast %cst_18 : f32 to vector<8x128xf32>
      %c0_19 = arith.constant 0 : index
      %c0_20 = arith.constant 0 : index
      %19 = vector.load %arg6[%c0_19, %c0_20] : memref<8x128xf32, #tpu.memory_space<vmem>>, vector<8x128xf32>
      tpu.vector_store %arg6[%c0_19, %c0_20], %18 {strides = array<i32>} : memref<8x128xf32, #tpu.memory_space<vmem>>, vector<8x128xf32>,
    } else {
    }
    %c0_7 = arith.constant 0 : index
    %c0_8 = arith.constant 0 : index
    %9 = vector.load %arg5[%c0_7, %c0_8] : memref<8x128xf32, #tpu.memory_space<vmem>>, vector<8x128xf32>
    %c0_9 = arith.constant 0 : index
    %c0_10 = arith.constant 0 : index
    %10 = vector.load %arg6[%c0_9, %c0_10] : memref<8x128xf32, #tpu.memory_space<vmem>>, vector<8x128xf32>
    %11 = arith.addf %9, %4 : vector<8x128xf32>
    %12 = arith.mulf %4, %4 : vector<8x128xf32>
    %13 = arith.addf %10, %12 : vector<8x128xf32>
    %c0_11 = arith.constant 0 : index
    %c0_12 = arith.constant 0 : index
    %14 = vector.load %arg5[%c0_11, %c0_12] : memref<8x128xf32, #tpu.memory_space<vmem>>, vector<8x128xf32>
    tpu.vector_store %arg5[%c0_11, %c0_12], %11 {strides = array<i32>} : memref<8x128xf32, #tpu.memory_space<vmem>>, vector<8x128xf32>,
    %c0_13 = arith.constant 0 : index
    %c0_14 = arith.constant 0 : index
    %15 = vector.load %arg6[%c0_13, %c0_14] : memref<8x128xf32, #tpu.memory_space<vmem>>, vector<8x128xf32>
    tpu.vector_store %arg6[%c0_13, %c0_14], %13 {strides = array<i32>} : memref<8x128xf32, #tpu.memory_space<vmem>>, vector<8x128xf32>,
    return
  }
  func.func @transform_0(%arg0: i32, %arg1: i32) -> (i32, i32) {
    %c1_i32 = arith.constant 1 : i32
    %0 = arith.muli %arg0, %c1_i32 : i32
    %1 = arith.addi %0, %arg1 : i32
    %c0_i32 = arith.constant 0 : i32
    %c0_i32_0 = arith.constant 0 : i32
    return %c0_i32, %1 : i32, i32
  }
  func.func @transform_1(%arg0: i32, %arg1: i32) -> (i32, i32) {
    %c0_i32 = arith.constant 0 : i32
    %c0_i32_0 = arith.constant 0 : i32
    %c0_i32_1 = arith.constant 0 : i32
    return %c0_i32, %c0_i32_0 : i32, i32
  }
  func.func @transform_2(%arg0: i32, %arg1: i32) -> (i32, i32) {
    %c1_i32 = arith.constant 1 : i32
    %0 = arith.muli %arg0, %c1_i32 : i32
    %1 = arith.addi %0, %arg1 : i32
    %c0_i32 = arith.constant 0 : i32
    %c0_i32_0 = arith.constant 0 : i32
    return %c0_i32, %1 : i32, i32
  }
  func.func @transform_3(%arg0: i32, %arg1: i32) -> (i32, i32) {
    %c0_i32 = arith.constant 0 : i32
    %c0_i32_0 = arith.constant 0 : i32
    return %c0_i32, %arg0 : i32, i32
  }
  func.func @transform_4(%arg0: i32, %arg1: i32) -> (i32, i32) {
    %c0_i32 = arith.constant 0 : i32
    %c0_i32_0 = arith.constant 0 : i32
    return %c0_i32, %arg0 : i32, i32
  }
}

module attributes {stable_mosaic.version = 11 : i64} {
  func.func @_bn_apply_kernel(%arg0: i32, %arg1: memref<8x128xf32, #tpu.memory_space<vmem>>, %arg2: memref<8x1xf32, #tpu.memory_space<vmem>>, %arg3: memref<8x1xf32, #tpu.memory_space<vmem>>, %arg4: memref<8x128xf32, #tpu.memory_space<vmem>>) attributes {dimension_semantics = [#tpu.dimension_semantics<parallel>], iteration_bounds = array<i64: 1>, scalar_prefetch = 0 : i64, scratch_operands = 0 : i64, tpu.core_type = #tpu.core_type<tc>, window_params = [{transform_indices = @transform_0, window_bounds = array<i64: 8, 128>}, {pipeline_mode = #tpu.pipeline_mode<synchronous>, transform_indices = @transform_1, window_bounds = array<i64: 8, 1>}, {pipeline_mode = #tpu.pipeline_mode<synchronous>, transform_indices = @transform_2, window_bounds = array<i64: 8, 1>}, {transform_indices = @transform_3, window_bounds = array<i64: 8, 128>}]} {
    %c0 = arith.constant 0 : index
    %c0_0 = arith.constant 0 : index
    %0 = vector.load %arg1[%c0, %c0_0] : memref<8x128xf32, #tpu.memory_space<vmem>>, vector<8x128xf32>
    %c0_1 = arith.constant 0 : index
    %c0_2 = arith.constant 0 : index
    %1 = vector.load %arg2[%c0_1, %c0_2] : memref<8x1xf32, #tpu.memory_space<vmem>>, vector<8x1xf32>
    %2 = vector.broadcast %1 : vector<8x1xf32> to vector<8x128xf32>
    %3 = arith.mulf %0, %2 : vector<8x128xf32>
    %c0_3 = arith.constant 0 : index
    %c0_4 = arith.constant 0 : index
    %4 = vector.load %arg3[%c0_3, %c0_4] : memref<8x1xf32, #tpu.memory_space<vmem>>, vector<8x1xf32>
    %5 = vector.broadcast %4 : vector<8x1xf32> to vector<8x128xf32>
    %6 = arith.addf %3, %5 : vector<8x128xf32>
    %c0_5 = arith.constant 0 : index
    %c0_6 = arith.constant 0 : index
    %7 = vector.load %arg4[%c0_5, %c0_6] : memref<8x128xf32, #tpu.memory_space<vmem>>, vector<8x128xf32>
    tpu.vector_store %arg4[%c0_5, %c0_6], %6 {strides = array<i32>} : memref<8x128xf32, #tpu.memory_space<vmem>>, vector<8x128xf32>,
    return
  }
  func.func @transform_0(%arg0: i32) -> (i32, i32) {
    %c0_i32 = arith.constant 0 : i32
    %c0_i32_0 = arith.constant 0 : i32
    return %c0_i32, %arg0 : i32, i32
  }
  func.func @transform_1(%arg0: i32) -> (i32, i32) {
    %c0_i32 = arith.constant 0 : i32
    %c0_i32_0 = arith.constant 0 : i32
    %c0_i32_1 = arith.constant 0 : i32
    return %c0_i32, %c0_i32_0 : i32, i32
  }
  func.func @transform_2(%arg0: i32) -> (i32, i32) {
    %c0_i32 = arith.constant 0 : i32
    %c0_i32_0 = arith.constant 0 : i32
    %c0_i32_1 = arith.constant 0 : i32
    return %c0_i32, %c0_i32_0 : i32, i32
  }
  func.func @transform_3(%arg0: i32) -> (i32, i32) {
    %c0_i32 = arith.constant 0 : i32
    %c0_i32_0 = arith.constant 0 : i32
    return %c0_i32, %arg0 : i32, i32
  }
}

</mosaic_0001>

<bundles_post_ra>
// kernel: factorized_reduce.3
= control target key start
LH: loop header
LB: loop body
LE: loop exit
PB: predicated region body
PF: predicated region fallthrough
CT: control target
= control target key end

     0   :  { %v36_v0 = vmov 0   ;;  %s69_s1 = inlined_call_operand.vmem [shape: f32[8,1], index: 1, kind: input, shape index: {}]   ;;  %s70_s2 = inlined_call_operand.vmem [shape: f32[8,1], index: 2, kind: input, shape index: {}]   ;;  %s71_s0 = inlined_call_operand.vmem [shape: f32[8,128], index: 0, kind: input, shape index: {}, may-alias: {0,3}]   ;;  %s72_s3 = inlined_call_operand.vmem [shape: f32[8,128], index: 3, kind: output, shape index: {}, may-alias: {0,3}]  }
   0x1   :  { %35 = vset.pattern.permute.xlu0 %v36_v0  ;;  %v15_v1 = vld [vmem:[%s69_s1] sm:$0xff] }
   0x2   :  { %18 = vperm.xlu0 %35, %v15_v1   ;;  %v22_v2 = vld [vmem:[%s70_s2] sm:$0xff] }
   0x3   :  { %v14_v4 = vld [vmem:[%s71_s0] sm:$0xff] }
   0x6   :  { %25 = vperm.xlu0 %35, %v22_v2  }
  0x7d   :  { %v19_v3 = vpop.permute.xlu0 %18 }
  0x7e   :  { %v21_v5 = vmul.f32 %v19_v3, %v14_v4 }
  0x81   :  { %v26_v6 = vpop.permute.xlu0 %25 }
  0x82   :  { %v28_v7 = vadd.f32 %v26_v6, %v21_v5 }
  0x84   :  { %29 = vst [vmem:[%s72_s3] sm:$0xff] %v28_v7 }

// kernel: factorized_reduce.2
= control target key start
LH: loop header
LB: loop body
LE: loop exit
PB: predicated region body
PF: predicated region fallthrough
CT: control target
= control target key end

     0   :  { %v180_v0 = vmov 0.0   ;;  %vm181_vm0 = vmmov 0   ;;  %vm45_vm1 = vcmask 64512   ;;  %s222_s0 = inlined_call_operand.vmem [shape: f32[8,128], index: 0, kind: input, shape index: {}]   ;;  %s223_s1 = inlined_call_operand.vmem [shape: f32[8,8], index: 1, kind: input, shape index: {}]   ;;  %s224_s2 = inlined_call_operand.vmem [shape: f32[8,128], index: 2, kind: output, shape index: {0}]   ;;  %s225_s3 = inlined_call_operand.vmem [shape: f32[8,128], index: 3, kind: output, shape index: {1}]   ;;  %s226_s4 = inlined_call_operand.vmem [shape: f32[8,128], index: 4, kind: output, shape index: {2}]  }
   0x1   :  { %173 = vmatprep.subr.mxu0 %v180_v0  ;;  %v42_v1 = vld [vmem:[%s222_s0] sm:$0xff]  ;;  %175 = vmatprep.mubr.msk.f32.mxu0 %vm181_vm0, %v180_v0 }
   0x2   :  { %v43_v2 = vmax.f32 %v42_v1, 0.0  ;;  %v44_v3 = vld [vmem:[%s223_s1] sm:$0xff] }
   0x4   :  { %174 = vmatpush3.msra.mxu0 %v43_v2 }
   0x5   :  { %176 = vmatmul.mubr.msk.f32.vlgmr.msra.gmra.mxu0 %vm45_vm1, %v44_v3 }
  0xc5   :  { %v115_v4 = vpop.f32.mrf.mxu0 }
  0xc6   :  { %119 = vst [vmem:[%s224_s2] sm:$0xff] %v115_v4  ;;  %v129_v5 = vmul.f32 %v115_v4, %v115_v4  ;;  %131 = vst [vmem:[%s225_s3] sm:$0xff] %v115_v4 }
  0xc7   :  { %v177_v6 = vpop.f32.mrf.mxu0 }
  0xc8   :  { %132 = vst [vmem:[%s226_s4] sm:$0xff] %v129_v5 }

</bundles_post_ra>
